<compile_context>
chip_gen: v5e
topology: v5e:2x2
jax: 0.10.0
libtpu: 0.0.40
codegen_flags: <defaults>
</compile_context>

<pallas_src>
import functools
import math

import jax
import jax.numpy as jnp
from jax.experimental import pallas as pl
from jax.experimental.pallas import tpu as pltpu


def _round_up(x, m):
    return (x + m - 1) // m * m


def _chip_vmem_limit_cap():
    """Per-chip scoped-VMEM ceiling: ~48 MiB on v7x (64 MiB/TC), up to
    96 MiB on v5e/v6e (128 MiB).  Conservative fallback if query fails."""
    phys = 64 << 20
    try:
        info = pltpu.get_tpu_info()
        cap = getattr(info, "vmem_capacity_bytes", None)
        if cap:
            phys = int(cap)
    except Exception:
        pass
    return min(96 << 20, (3 * phys) // 4)


def fused_conv_bn(x_nchw, w_oihw, *, padding=1, eps=1e-3):
    """Forward pass of FusedConvBN (stride fixed to 1, matching the module)."""
    N, Cin, H, W = x_nchw.shape
    Cout, Cin_w, KH, KW = w_oihw.shape
    assert Cin == Cin_w
    Hp, Wp = H + 2 * padding, W + 2 * padding
    Ho, Wo = Hp - KH + 1, Wp - KW + 1
    assert Ho >= 1 and Wo >= 1
    T = KH * KW
    L = Ho * Wp                       # lane-dense conv rows incl. KW-1 wrap cols/row
    dt = x_nchw.dtype
    item = jnp.dtype(dt).itemsize

    # Pad the per-tap contraction axis (Cin) to the f32 sublane granule.
    Cin_p = max(8, _round_up(Cin, 8))

    # Cout tiling bounds the per-step VMEM / accumulator and adds a second
    # parallel grid axis for wide layers (v7x megacore sharding).
    TCo = 128 if (Cout > 128 and Cout % 128 == 0) else Cout
    CT = Cout // TCo

    # ---------- wrapper-side prep (cheap, ~1x traffic over x) ----------
    x_pad = jnp.pad(x_nchw, ((0, 0), (0, Cin_p - Cin),
                             (padding, padding), (padding, padding)))
    Lpad = _round_up(Hp * Wp + KW - 1, 128)       # room for the largest tap shift
    x_flat = jnp.pad(x_pad.reshape(N, Cin_p, Hp * Wp),
                     ((0, 0), (0, 0), (0, Lpad - Hp * Wp)))
    # taps: (T, Cout, Cin_p); tap t = (kh, kw) pairs with flat shift kh*Wp + kw.
    w_t = jnp.pad(jnp.transpose(w_oihw, (2, 3, 0, 1)).reshape(T, Cout, Cin),
                  ((0, 0), (0, 0), (0, Cin_p - Cin))).astype(dt)
    tap_off = tuple(kh * Wp + kw for kh in range(KH) for kw in range(KW))
    # 0/1 mask of the Wo valid columns out of every Wp (excludes wrap columns).
    colmask = (jnp.arange(L, dtype=jnp.int32) % Wp < Wo)
    colmask = colmask.astype(jnp.float32).reshape(1, L)

    # Bound the live f32 accumulator to ~128 KiB per chunk (<= ~32 vregs).
    chunk = max(128, (128 * 1024) // (TCo * 4) // 128 * 128)
    chunk = min(chunk, L)

    vmem_cap = _chip_vmem_limit_cap()

    # ---------------- pass 1: conv (in-kernel im2col) + stats ----------------
    def _conv_stats_kernel(x_ref, w_ref, m_ref, y_ref, s_ref):
        # x_ref: (1, Cin_p, Lpad)  flattened padded image
        # w_ref: (T, TCo, Cin_p)   per-tap weights
        # m_ref: (1, L)            valid-column mask
        # y_ref: (1, TCo, L)       conv output (lane-dense, incl. wrap cols)
        # s_ref: (1, 2, TCo)       per-image (sum, sum_sq) per channel
        s_tot = jnp.zeros((TCo,), jnp.float32)
        q_tot = jnp.zeros((TCo,), jnp.float32)
        for c0 in range(0, L, chunk):                  # static, unrolled
            cw = min(chunk, L - c0)
            acc = jnp.zeros((TCo, cw), jnp.float32)
            for t in range(T):                         # KH*KW shifted matmuls
                off = tap_off[t] + c0
                acc = acc + jnp.dot(w_ref[t], x_ref[0, :, off:off + cw],
                                    preferred_element_type=jnp.float32)
            y_ref[0, :, c0:c0 + cw] = acc.astype(y_ref.dtype)
            masked = acc * m_ref[:, c0:c0 + cw]        # zero out wrap columns
            s_tot = s_tot + jnp.sum(masked, axis=1)
            q_tot = q_tot + jnp.sum(masked * acc, axis=1)
        s_ref[0, 0, :] = s_tot
        s_ref[0, 1, :] = q_tot

    p1_vmem = (2 * Cin_p * Lpad * item          # x slab (double-buffered)
               + 2 * T * Cout * Cin_p * item    # taps
               + 2 * L * 4                      # column mask
               + 2 * TCo * L * item             # y tile
               + 2 * 2 * TCo * 4                # stats tile
               + TCo * chunk * 4)               # live f32 accumulator
    p1_limit = int(min(max(2 * p1_vmem + (1 << 20), 16 << 20), vmem_cap))

    y, stats = pl.pallas_call(
        _conv_stats_kernel,
        grid=(N, CT),
        in_specs=[
            pl.BlockSpec((1, Cin_p, Lpad), lambda n, c: (n, 0, 0)),
            pl.BlockSpec((T, TCo, Cin_p), lambda n, c: (0, c, 0)),
            pl.BlockSpec((1, L), lambda n, c: (0, 0)),
        ],
        out_specs=(
            pl.BlockSpec((1, TCo, L), lambda n, c: (n, c, 0)),
            pl.BlockSpec((1, 2, TCo), lambda n, c: (n, 0, c)),
        ),
        out_shape=(
            jax.ShapeDtypeStruct((N, Cout, L), dt),
            jax.ShapeDtypeStruct((N, 2, Cout), jnp.float32),
        ),
        compiler_params=pltpu.CompilerParams(
            dimension_semantics=("parallel", "parallel"),
            vmem_limit_bytes=p1_limit),
        cost_estimate=pl.CostEstimate(
            flops=int(2 * N * Cout * Cin_p * T * L),
            transcendentals=0,
            bytes_accessed=int(x_flat.size) * item + int(w_t.size) * item
                           + L * 4 + N * Cout * L * item + N * 2 * Cout * 4),
    )(x_flat, w_t, colmask)

    # ---- tiny glue: O(N*Cout) reduce -> per-channel scale / shift ----
    # (stats are per-image already, so this is a handful of floats; fusing it
    # into pass 2 via SMEM would save one negligible XLA launch.)
    cnt = N * Ho * Wo
    sums = stats[:, 0, :].sum(axis=0)
    sqs = stats[:, 1, :].sum(axis=0)
    mean = sums / cnt
    # unbiased variance (torch.var(unbiased=True)).
    # TODO(synk): use a Welford/centered merge if cnt grows large enough for
    # f32 sum-of-squares cancellation to matter.
    var = (sqs - cnt * mean * mean) / (cnt - 1)
    denom = jnp.sqrt(var) + eps                  # eps AFTER sqrt (matches module)
    scale = (1.0 / denom).astype(jnp.float32).reshape(Cout, 1, 1)
    shift = (-mean / denom).astype(jnp.float32).reshape(Cout, 1, 1)

    # ------------- pass 2: normalize + drop wrap columns -> NCHW -------------
    y4 = y.reshape(N, Cout, Ho, Wp)              # free row-major reshape

    def _normalize_kernel(y_ref, sc_ref, sh_ref, o_ref):
        # y_ref: (1, TCo, Ho, Wp); sc/sh: (TCo, 1, 1); o_ref: (1, TCo, Ho, Wo)
        yv = y_ref[0, :, :, :Wo].astype(jnp.float32)
        o_ref[0] = (yv * sc_ref[...] + sh_ref[...]).astype(o_ref.dtype)
        # TODO(synk): pack rows into a 128-lane-dense store for mid-size Wo
        # (needs an in-kernel (Ho,Wo)->(Ho*Wo) relayout); NCHW forces Wo-wide
        # stores here.

    p2_vmem = (2 * TCo * Ho * Wp * item + 2 * TCo * Ho * Wo * item
               + 4 * TCo * 8 * 128 * 4)
    p2_limit = int(min(max(2 * p2_vmem + (1 << 20), 16 << 20), vmem_cap))

    out = pl.pallas_call(
        _normalize_kernel,
        grid=(N, CT),
        in_specs=[
            pl.BlockSpec((1, TCo, Ho, Wp), lambda n, c: (n, c, 0, 0)),
            pl.BlockSpec((TCo, 1, 1), lambda n, c: (c, 0, 0)),
            pl.BlockSpec((TCo, 1, 1), lambda n, c: (c, 0, 0)),
        ],
        out_specs=pl.BlockSpec((1, TCo, Ho, Wo), lambda n, c: (n, c, 0, 0)),
        out_shape=jax.ShapeDtypeStruct((N, Cout, Ho, Wo), dt),
        compiler_params=pltpu.CompilerParams(
            dimension_semantics=("parallel", "parallel"),
            vmem_limit_bytes=p2_limit),
        cost_estimate=pl.CostEstimate(
            flops=int(2 * N * Cout * Ho * Wo),
            transcendentals=0,
            bytes_accessed=int(N * Cout * Ho * (Wp + Wo)) * item + 2 * Cout * 4),
    )(y4, scale, shift)

    return out


def _reference(x_nchw, w_oihw, padding, eps):
    """Pure-JAX reference mirroring FusedConvBN2DFunction.forward."""
    y = jax.lax.conv_general_dilated(
        x_nchw, w_oihw, window_strides=(1, 1),
        padding=[(padding, padding), (padding, padding)],
        dimension_numbers=("NCHW", "OIHW", "NCHW"))
    c = y.shape[1]
    cnt = y.size // c
    s = y.sum(axis=(0, 2, 3))
    mean = s / cnt
    var = ((y - mean[None, :, None, None]) ** 2).sum(axis=(0, 2, 3)) / (cnt - 1)
    denom = jnp.sqrt(var) + eps
    return (y - mean[None, :, None, None]) / denom[None, :, None, None]


if __name__ == "__main__":
    # Module config: in_channels=4, out_channels=8, kernel_size=3, padding=1
    in_channels, out_channels, kernel_size, padding, eps = 4, 8, 3, 1, 1e-3
    batch, spatial = 2, 16

    key = jax.random.PRNGKey(0)
    k_x, k_w = jax.random.split(key)

    x = jax.random.normal(k_x, (batch, in_channels, spatial, spatial),
                          dtype=jnp.float32)

    # reset_parameters: uniform(-stdv, stdv), stdv = 1/sqrt(Cin * K * K)
    stdv = 1.0 / math.sqrt(in_channels * kernel_size * kernel_size)
    w = jax.random.uniform(
        k_w, (out_channels, in_channels, kernel_size, kernel_size),
        minval=-stdv, maxval=stdv, dtype=jnp.float32)

    fused = jax.jit(functools.partial(fused_conv_bn, padding=padding, eps=eps))
    out = jax.block_until_ready(fused(x, w))

    ref = jax.block_until_ready(_reference(x, w, padding, eps))
    assert out.shape == ref.shape == (batch, out_channels, spatial, spatial)
    assert jnp.allclose(out, ref, rtol=1e-3, atol=1e-3), "mismatch vs reference"

    print("KERNEL_OK")
</pallas_src>

<mosaic_0001>
module attributes {stable_mosaic.version = 11 : i64} {
  func.func @_conv_stats_kernel(%arg0: i32, %arg1: i32, %arg2: memref<1x8x384xf32, #tpu.memory_space<vmem>>, %arg3: memref<9x8x8xf32, #tpu.memory_space<vmem>>, %arg4: memref<1x288xf32, #tpu.memory_space<vmem>>, %arg5: memref<1x8x288xf32, #tpu.memory_space<vmem>>, %arg6: memref<1x2x8xf32, #tpu.memory_space<vmem>>) attributes {dimension_semantics = [#tpu.dimension_semantics<parallel>, #tpu.dimension_semantics<parallel>], iteration_bounds = array<i64: 2, 1>, scalar_prefetch = 0 : i64, scratch_operands = 0 : i64, tpu.core_type = #tpu.core_type<tc>, window_params = [{transform_indices = @transform_0, window_bounds = array<i64: 1, 8, 384>}, {transform_indices = @transform_1, window_bounds = array<i64: 9, 8, 8>}, {pipeline_mode = #tpu.pipeline_mode<synchronous>, transform_indices = @transform_2, window_bounds = array<i64: 1, 288>}, {transform_indices = @transform_3, window_bounds = array<i64: 1, 8, 288>}, {transform_indices = @transform_4, window_bounds = array<i64: 1, 2, 8>}]} {
    %cst = arith.constant 0.000000e+00 : f32
    %0 = vector.broadcast %cst : f32 to vector<8xf32>
    %cst_0 = arith.constant 0.000000e+00 : f32
    %1 = vector.broadcast %cst_0 : f32 to vector<8xf32>
    %cst_1 = arith.constant 0.000000e+00 : f32
    %2 = vector.broadcast %cst_1 : f32 to vector<8x288xf32>
    %c0 = arith.constant 0 : index
    %c0_2 = arith.constant 0 : index
    %c0_3 = arith.constant 0 : index
    %3 = vector.load %arg3[%c0, %c0_2, %c0_3] : memref<9x8x8xf32, #tpu.memory_space<vmem>>, vector<1x8x8xf32>
    %4 = vector.shape_cast %3 : vector<1x8x8xf32> to vector<8x8xf32>
    %c0_4 = arith.constant 0 : index
    %c0_5 = arith.constant 0 : index
    %c0_6 = arith.constant 0 : index
    %5 = vector.load %arg2[%c0_4, %c0_5, %c0_6] : memref<1x8x384xf32, #tpu.memory_space<vmem>>, vector<1x8x288xf32>
    %6 = vector.shape_cast %5 : vector<1x8x288xf32> to vector<8x288xf32>
    %cst_7 = arith.constant dense<0.000000e+00> : vector<8x288xf32>
    %7 = tpu.matmul %4, %6, %cst_7 {dimension_numbers = #tpu.dot_dimension_numbers<[1], [0], [0], [1], [0, 0, 1, 1], [], []>} : vector<8x8xf32>, vector<8x288xf32>, vector<8x288xf32> -> vector<8x288xf32>
    %8 = arith.addf %2, %7 : vector<8x288xf32>
    %c1 = arith.constant 1 : index
    %c0_8 = arith.constant 0 : index
    %c0_9 = arith.constant 0 : index
    %9 = vector.load %arg3[%c1, %c0_8, %c0_9] : memref<9x8x8xf32, #tpu.memory_space<vmem>>, vector<1x8x8xf32>
    %10 = vector.shape_cast %9 : vector<1x8x8xf32> to vector<8x8xf32>
    %c0_10 = arith.constant 0 : index
    %c0_11 = arith.constant 0 : index
    %c1_12 = arith.constant 1 : index
    %11 = vector.load %arg2[%c0_10, %c0_11, %c1_12] : memref<1x8x384xf32, #tpu.memory_space<vmem>>, vector<1x8x288xf32>
    %12 = vector.shape_cast %11 : vector<1x8x288xf32> to vector<8x288xf32>
    %cst_13 = arith.constant dense<0.000000e+00> : vector<8x288xf32>
    %13 = tpu.matmul %10, %12, %cst_13 {dimension_numbers = #tpu.dot_dimension_numbers<[1], [0], [0], [1], [0, 0, 1, 1], [], []>} : vector<8x8xf32>, vector<8x288xf32>, vector<8x288xf32> -> vector<8x288xf32>
    %14 = arith.addf %8, %13 : vector<8x288xf32>
    %c2 = arith.constant 2 : index
    %c0_14 = arith.constant 0 : index
    %c0_15 = arith.constant 0 : index
    %15 = vector.load %arg3[%c2, %c0_14, %c0_15] : memref<9x8x8xf32, #tpu.memory_space<vmem>>, vector<1x8x8xf32>
    %16 = vector.shape_cast %15 : vector<1x8x8xf32> to vector<8x8xf32>
    %c0_16 = arith.constant 0 : index
    %c0_17 = arith.constant 0 : index
    %c2_18 = arith.constant 2 : index
    %17 = vector.load %arg2[%c0_16, %c0_17, %c2_18] : memref<1x8x384xf32, #tpu.memory_space<vmem>>, vector<1x8x288xf32>
    %18 = vector.shape_cast %17 : vector<1x8x288xf32> to vector<8x288xf32>
    %cst_19 = arith.constant dense<0.000000e+00> : vector<8x288xf32>
    %19 = tpu.matmul %16, %18, %cst_19 {dimension_numbers = #tpu.dot_dimension_numbers<[1], [0], [0], [1], [0, 0, 1, 1], [], []>} : vector<8x8xf32>, vector<8x288xf32>, vector<8x288xf32> -> vector<8x288xf32>
    %20 = arith.addf %14, %19 : vector<8x288xf32>
    %c3 = arith.constant 3 : index
    %c0_20 = arith.constant 0 : index
    %c0_21 = arith.constant 0 : index
    %21 = vector.load %arg3[%c3, %c0_20, %c0_21] : memref<9x8x8xf32, #tpu.memory_space<vmem>>, vector<1x8x8xf32>
    %22 = vector.shape_cast %21 : vector<1x8x8xf32> to vector<8x8xf32>
    %c0_22 = arith.constant 0 : index
    %c0_23 = arith.constant 0 : index
    %c18 = arith.constant 18 : index
    %23 = vector.load %arg2[%c0_22, %c0_23, %c18] : memref<1x8x384xf32, #tpu.memory_space<vmem>>, vector<1x8x288xf32>
    %24 = vector.shape_cast %23 : vector<1x8x288xf32> to vector<8x288xf32>
    %cst_24 = arith.constant dense<0.000000e+00> : vector<8x288xf32>
    %25 = tpu.matmul %22, %24, %cst_24 {dimension_numbers = #tpu.dot_dimension_numbers<[1], [0], [0], [1], [0, 0, 1, 1], [], []>} : vector<8x8xf32>, vector<8x288xf32>, vector<8x288xf32> -> vector<8x288xf32>
    %26 = arith.addf %20, %25 : vector<8x288xf32>
    %c4 = arith.constant 4 : index
    %c0_25 = arith.constant 0 : index
    %c0_26 = arith.constant 0 : index
    %27 = vector.load %arg3[%c4, %c0_25, %c0_26] : memref<9x8x8xf32, #tpu.memory_space<vmem>>, vector<1x8x8xf32>
    %28 = vector.shape_cast %27 : vector<1x8x8xf32> to vector<8x8xf32>
    %c0_27 = arith.constant 0 : index
    %c0_28 = arith.constant 0 : index
    %c19 = arith.constant 19 : index
    %29 = vector.load %arg2[%c0_27, %c0_28, %c19] : memref<1x8x384xf32, #tpu.memory_space<vmem>>, vector<1x8x288xf32>
    %30 = vector.shape_cast %29 : vector<1x8x288xf32> to vector<8x288xf32>
    %cst_29 = arith.constant dense<0.000000e+00> : vector<8x288xf32>
    %31 = tpu.matmul %28, %30, %cst_29 {dimension_numbers = #tpu.dot_dimension_numbers<[1], [0], [0], [1], [0, 0, 1, 1], [], []>} : vector<8x8xf32>, vector<8x288xf32>, vector<8x288xf32> -> vector<8x288xf32>
    %32 = arith.addf %26, %31 : vector<8x288xf32>
    %c5 = arith.constant 5 : index
    %c0_30 = arith.constant 0 : index
    %c0_31 = arith.constant 0 : index
    %33 = vector.load %arg3[%c5, %c0_30, %c0_31] : memref<9x8x8xf32, #tpu.memory_space<vmem>>, vector<1x8x8xf32>
    %34 = vector.shape_cast %33 : vector<1x8x8xf32> to vector<8x8xf32>
    %c0_32 = arith.constant 0 : index
    %c0_33 = arith.constant 0 : index
    %c20 = arith.constant 20 : index
    %35 = vector.load %arg2[%c0_32, %c0_33, %c20] : memref<1x8x384xf32, #tpu.memory_space<vmem>>, vector<1x8x288xf32>
    %36 = vector.shape_cast %35 : vector<1x8x288xf32> to vector<8x288xf32>
    %cst_34 = arith.constant dense<0.000000e+00> : vector<8x288xf32>
    %37 = tpu.matmul %34, %36, %cst_34 {dimension_numbers = #tpu.dot_dimension_numbers<[1], [0], [0], [1], [0, 0, 1, 1], [], []>} : vector<8x8xf32>, vector<8x288xf32>, vector<8x288xf32> -> vector<8x288xf32>
    %38 = arith.addf %32, %37 : vector<8x288xf32>
    %c6 = arith.constant 6 : index
    %c0_35 = arith.constant 0 : index
    %c0_36 = arith.constant 0 : index
    %39 = vector.load %arg3[%c6, %c0_35, %c0_36] : memref<9x8x8xf32, #tpu.memory_space<vmem>>, vector<1x8x8xf32>
    %40 = vector.shape_cast %39 : vector<1x8x8xf32> to vector<8x8xf32>
    %c0_37 = arith.constant 0 : index
    %c0_38 = arith.constant 0 : index
    %c36 = arith.constant 36 : index
    %41 = vector.load %arg2[%c0_37, %c0_38, %c36] : memref<1x8x384xf32, #tpu.memory_space<vmem>>, vector<1x8x288xf32>
    %42 = vector.shape_cast %41 : vector<1x8x288xf32> to vector<8x288xf32>
    %cst_39 = arith.constant dense<0.000000e+00> : vector<8x288xf32>
    %43 = tpu.matmul %40, %42, %cst_39 {dimension_numbers = #tpu.dot_dimension_numbers<[1], [0], [0], [1], [0, 0, 1, 1], [], []>} : vector<8x8xf32>, vector<8x288xf32>, vector<8x288xf32> -> vector<8x288xf32>
    %44 = arith.addf %38, %43 : vector<8x288xf32>
    %c7 = arith.constant 7 : index
    %c0_40 = arith.constant 0 : index
    %c0_41 = arith.constant 0 : index
    %45 = vector.load %arg3[%c7, %c0_40, %c0_41] : memref<9x8x8xf32, #tpu.memory_space<vmem>>, vector<1x8x8xf32>
    %46 = vector.shape_cast %45 : vector<1x8x8xf32> to vector<8x8xf32>
    %c0_42 = arith.constant 0 : index
    %c0_43 = arith.constant 0 : index
    %c37 = arith.constant 37 : index
    %47 = vector.load %arg2[%c0_42, %c0_43, %c37] : memref<1x8x384xf32, #tpu.memory_space<vmem>>, vector<1x8x288xf32>
    %48 = vector.shape_cast %47 : vector<1x8x288xf32> to vector<8x288xf32>
    %cst_44 = arith.constant dense<0.000000e+00> : vector<8x288xf32>
    %49 = tpu.matmul %46, %48, %cst_44 {dimension_numbers = #tpu.dot_dimension_numbers<[1], [0], [0], [1], [0, 0, 1, 1], [], []>} : vector<8x8xf32>, vector<8x288xf32>, vector<8x288xf32> -> vector<8x288xf32>
    %50 = arith.addf %44, %49 : vector<8x288xf32>
    %c8 = arith.constant 8 : index
    %c0_45 = arith.constant 0 : index
    %c0_46 = arith.constant 0 : index
    %51 = vector.load %arg3[%c8, %c0_45, %c0_46] : memref<9x8x8xf32, #tpu.memory_space<vmem>>, vector<1x8x8xf32>
    %52 = vector.shape_cast %51 : vector<1x8x8xf32> to vector<8x8xf32>
    %c0_47 = arith.constant 0 : index
    %c0_48 = arith.constant 0 : index
    %c38 = arith.constant 38 : index
    %53 = vector.load %arg2[%c0_47, %c0_48, %c38] : memref<1x8x384xf32, #tpu.memory_space<vmem>>, vector<1x8x288xf32>
    %54 = vector.shape_cast %53 : vector<1x8x288xf32> to vector<8x288xf32>
    %cst_49 = arith.constant dense<0.000000e+00> : vector<8x288xf32>
    %55 = tpu.matmul %52, %54, %cst_49 {dimension_numbers = #tpu.dot_dimension_numbers<[1], [0], [0], [1], [0, 0, 1, 1], [], []>} : vector<8x8xf32>, vector<8x288xf32>, vector<8x288xf32> -> vector<8x288xf32>
    %56 = arith.addf %50, %55 : vector<8x288xf32>
    %c0_50 = arith.constant 0 : index
    %c0_51 = arith.constant 0 : index
    %c0_52 = arith.constant 0 : index
    %57 = vector.load %arg5[%c0_50, %c0_51, %c0_52] : memref<1x8x288xf32, #tpu.memory_space<vmem>>, vector<1x8x288xf32>
    %58 = vector.shape_cast %57 : vector<1x8x288xf32> to vector<8x288xf32>
    %59 = vector.shape_cast %56 : vector<8x288xf32> to vector<1x8x288xf32>
    tpu.vector_store %arg5[%c0_50, %c0_51, %c0_52], %59 {strides = array<i32>} : memref<1x8x288xf32, #tpu.memory_space<vmem>>, vector<1x8x288xf32>,
    %c0_53 = arith.constant 0 : index
    %c0_54 = arith.constant 0 : index
    %60 = vector.load %arg4[%c0_53, %c0_54] : memref<1x288xf32, #tpu.memory_space<vmem>>, vector<1x288xf32>
    %61 = vector.broadcast %60 : vector<1x288xf32> to vector<8x288xf32>
    %62 = arith.mulf %56, %61 : vector<8x288xf32>
    %cst_55 = arith.constant dense<0.000000e+00> : vector<8xf32>
    %63 = vector.multi_reduction <add>, %62, %cst_55 [1] : vector<8x288xf32> to vector<8xf32>
    %64 = arith.addf %0, %63 : vector<8xf32>
    %65 = arith.mulf %62, %56 : vector<8x288xf32>
    %cst_56 = arith.constant dense<0.000000e+00> : vector<8xf32>
    %66 = vector.multi_reduction <add>, %65, %cst_56 [1] : vector<8x288xf32> to vector<8xf32>
    %67 = arith.addf %1, %66 : vector<8xf32>
    %c0_57 = arith.constant 0 : index
    %c0_58 = arith.constant 0 : index
    %c0_59 = arith.constant 0 : index
    %68 = vector.load %arg6[%c0_57, %c0_58, %c0_59] : memref<1x2x8xf32, #tpu.memory_space<vmem>>, vector<1x1x8xf32>
    %69 = vector.shape_cast %68 : vector<1x1x8xf32> to vector<8xf32>
    %70 = vector.shape_cast %64 : vector<8xf32> to vector<1x1x8xf32>
    tpu.vector_store %arg6[%c0_57, %c0_58, %c0_59], %70 {strides = array<i32>} : memref<1x2x8xf32, #tpu.memory_space<vmem>>, vector<1x1x8xf32>,
    %c0_60 = arith.constant 0 : index
    %c1_61 = arith.constant 1 : index
    %c0_62 = arith.constant 0 : index
    %71 = vector.load %arg6[%c0_60, %c1_61, %c0_62] : memref<1x2x8xf32, #tpu.memory_space<vmem>>, vector<1x1x8xf32>
    %72 = vector.shape_cast %71 : vector<1x1x8xf32> to vector<8xf32>
    %73 = vector.shape_cast %67 : vector<8xf32> to vector<1x1x8xf32>
    tpu.vector_store %arg6[%c0_60, %c1_61, %c0_62], %73 {strides = array<i32>} : memref<1x2x8xf32, #tpu.memory_space<vmem>>, vector<1x1x8xf32>,
    return
  }
  func.func @transform_0(%arg0: i32, %arg1: i32) -> (i32, i32, i32) {
    %c0_i32 = arith.constant 0 : i32
    %c0_i32_0 = arith.constant 0 : i32
    %c0_i32_1 = arith.constant 0 : i32
    return %arg0, %c0_i32, %c0_i32_0 : i32, i32, i32
  }
  func.func @transform_1(%arg0: i32, %arg1: i32) -> (i32, i32, i32) {
    %c0_i32 = arith.constant 0 : i32
    %c0_i32_0 = arith.constant 0 : i32
    %c0_i32_1 = arith.constant 0 : i32
    return %c0_i32, %arg1, %c0_i32_0 : i32, i32, i32
  }
  func.func @transform_2(%arg0: i32, %arg1: i32) -> (i32, i32) {
    %c0_i32 = arith.constant 0 : i32
    %c0_i32_0 = arith.constant 0 : i32
    %c0_i32_1 = arith.constant 0 : i32
    return %c0_i32, %c0_i32_0 : i32, i32
  }
  func.func @transform_3(%arg0: i32, %arg1: i32) -> (i32, i32, i32) {
    %c0_i32 = arith.constant 0 : i32
    %c0_i32_0 = arith.constant 0 : i32
    return %arg0, %arg1, %c0_i32 : i32, i32, i32
  }
  func.func @transform_4(%arg0: i32, %arg1: i32) -> (i32, i32, i32) {
    %c0_i32 = arith.constant 0 : i32
    %c0_i32_0 = arith.constant 0 : i32
    return %arg0, %c0_i32, %arg1 : i32, i32, i32
  }
}

module attributes {stable_mosaic.version = 11 : i64} {
  func.func @_normalize_kernel(%arg0: i32, %arg1: i32, %arg2: memref<1x8x16x18xf32, #tpu.memory_space<vmem>>, %arg3: memref<8x1x1xf32, #tpu.memory_space<vmem>>, %arg4: memref<8x1x1xf32, #tpu.memory_space<vmem>>, %arg5: memref<1x8x16x16xf32, #tpu.memory_space<vmem>>) attributes {dimension_semantics = [#tpu.dimension_semantics<parallel>, #tpu.dimension_semantics<parallel>], iteration_bounds = array<i64: 2, 1>, scalar_prefetch = 0 : i64, scratch_operands = 0 : i64, tpu.core_type = #tpu.core_type<tc>, window_params = [{transform_indices = @transform_0, window_bounds = array<i64: 1, 8, 16, 18>}, {transform_indices = @transform_1, window_bounds = array<i64: 8, 1, 1>}, {transform_indices = @transform_2, window_bounds = array<i64: 8, 1, 1>}, {transform_indices = @transform_3, window_bounds = array<i64: 1, 8, 16, 16>}]} {
    %c0 = arith.constant 0 : index
    %c0_0 = arith.constant 0 : index
    %c0_1 = arith.constant 0 : index
    %c0_2 = arith.constant 0 : index
    %0 = vector.load %arg2[%c0, %c0_0, %c0_1, %c0_2] : memref<1x8x16x18xf32, #tpu.memory_space<vmem>>, vector<1x8x16x16xf32>
    %1 = vector.shape_cast %0 : vector<1x8x16x16xf32> to vector<8x16x16xf32>
    %c0_3 = arith.constant 0 : index
    %c0_4 = arith.constant 0 : index
    %c0_5 = arith.constant 0 : index
    %2 = vector.load %arg3[%c0_3, %c0_4, %c0_5] : memref<8x1x1xf32, #tpu.memory_space<vmem>>, vector<8x1x1xf32>
    %3 = vector.broadcast %2 : vector<8x1x1xf32> to vector<8x16x16xf32>
    %4 = arith.mulf %1, %3 : vector<8x16x16xf32>
    %c0_6 = arith.constant 0 : index
    %c0_7 = arith.constant 0 : index
    %c0_8 = arith.constant 0 : index
    %5 = vector.load %arg4[%c0_6, %c0_7, %c0_8] : memref<8x1x1xf32, #tpu.memory_space<vmem>>, vector<8x1x1xf32>
    %6 = vector.broadcast %5 : vector<8x1x1xf32> to vector<8x16x16xf32>
    %7 = arith.addf %4, %6 : vector<8x16x16xf32>
    %c0_9 = arith.constant 0 : index
    %c0_10 = arith.constant 0 : index
    %c0_11 = arith.constant 0 : index
    %c0_12 = arith.constant 0 : index
    %8 = vector.load %arg5[%c0_9, %c0_10, %c0_11, %c0_12] : memref<1x8x16x16xf32, #tpu.memory_space<vmem>>, vector<1x8x16x16xf32>
    %9 = vector.shape_cast %8 : vector<1x8x16x16xf32> to vector<8x16x16xf32>
    %10 = vector.shape_cast %7 : vector<8x16x16xf32> to vector<1x8x16x16xf32>
    tpu.vector_store %arg5[%c0_9, %c0_10, %c0_11, %c0_12], %10 {strides = array<i32>} : memref<1x8x16x16xf32, #tpu.memory_space<vmem>>, vector<1x8x16x16xf32>,
    return
  }
  func.func @transform_0(%arg0: i32, %arg1: i32) -> (i32, i32, i32, i32) {
    %c0_i32 = arith.constant 0 : i32
    %c0_i32_0 = arith.constant 0 : i32
    %c0_i32_1 = arith.constant 0 : i32
    return %arg0, %arg1, %c0_i32, %c0_i32_0 : i32, i32, i32, i32
  }
  func.func @transform_1(%arg0: i32, %arg1: i32) -> (i32, i32, i32) {
    %c0_i32 = arith.constant 0 : i32
    %c0_i32_0 = arith.constant 0 : i32
    %c0_i32_1 = arith.constant 0 : i32
    return %arg1, %c0_i32, %c0_i32_0 : i32, i32, i32
  }
  func.func @transform_2(%arg0: i32, %arg1: i32) -> (i32, i32, i32) {
    %c0_i32 = arith.constant 0 : i32
    %c0_i32_0 = arith.constant 0 : i32
    %c0_i32_1 = arith.constant 0 : i32
    return %arg1, %c0_i32, %c0_i32_0 : i32, i32, i32
  }
  func.func @transform_3(%arg0: i32, %arg1: i32) -> (i32, i32, i32, i32) {
    %c0_i32 = arith.constant 0 : i32
    %c0_i32_0 = arith.constant 0 : i32
    %c0_i32_1 = arith.constant 0 : i32
    return %arg0, %arg1, %c0_i32, %c0_i32_0 : i32, i32, i32, i32
  }
}

</mosaic_0001>

<bundles_post_ra>
// kernel: fused_conv_bn.3
= control target key start
LH: loop header
LB: loop body
LE: loop exit
PB: predicated region body
PF: predicated region fallthrough
CT: control target
= control target key end

     0   :  { %8 = vsyncpa [#allocation3], 0  ;;  %s950_s0 = inlined_call_operand.vmem [shape: f32[2,8,16,18], index: 0, kind: input, shape index: {}]   ;;  %s951_s1 = inlined_call_operand.vmem [shape: f32[8,1,1], index: 1, kind: input, shape index: {}]   ;;  %s952_s2 = inlined_call_operand.vmem [shape: f32[8,1,1], index: 2, kind: input, shape index: {}]   ;;  %s953_s3 = inlined_call_operand.hbm [shape: f32[2,8,16,16], index: 3, kind: output, shape index: {}]  }
   0x1   :  { %10 = vsyncpa [#allocation3 + $0x1], 0  ;;  %s740_s12 = smov 0   ;;  %s742_s13 = smov 0  }
   0x2   :  { %s744_s14 = smov 0   ;;  %s746_s15 = smov 0  }
   0x3   :  { %s748_s16 = smov 0   ;;  %s750_s17 = smov 0  }
   0x4 LB: > { %s543_s18 = sadd.s32 4294967295, %s715_s17   ;;  %s544_s19 = sadd.s32 4294967294, %s715_s17   ;;  %s715_s17 = sphi %s750_s17, %s16_s17   ;;  %s711_s16 = sphi %s748_s16, %s960_s16   ;;  %s707_s15 = sphi %s746_s15, %s959_s15   ;;  %s703_s14 = sphi %s744_s14, %s958_s14   ;;  %s699_s13 = sphi %s742_s13, %s957_s13   ;;  %s695_s12 = sphi %s740_s12, %s956_s12  }
   0x5   : > { %s28_s20 = sadd.s32 1, %s711_s16  ;;  %s117_s21 = sadd.s32 1, %s703_s14 }
   0x6   : > { %p30_p0 = scmp.ge.s32.totalorder %s28_s20, 2  ;;  %p127_p1 = scmp.ne.s32.totalorder %s703_s14, %s699_s13 }
   0x7   : > { %p128_p2 = scmp.eq.s32.totalorder %s543_s18, 1  ;;  %p133_p3 = scmp.ne.s32.totalorder %s699_s13, %s695_s12 }
   0x8   : > { %s962_s20 = smov (%p30_p0, %s28_s20), 0  ;;  %p134_p5 = scmp.eq.s32.totalorder %s544_s19, 1 }
   0x9   : > { %p780_p4 = por %p128_p2, %p127_p1  ;;  %s112_s23 = ssub.s32 %s711_s16, %s962_s20 }
   0xa   : > { %p549_p6 = scmp.ge.s32.totalorder %s715_s17, 1  ;;  %p115_p7 = scmp.eq.s32.totalorder %s112_s23, 0 }
   0xb   : > { %p787_p8 = por %p134_p5, %p133_p3  ;;  %p182_p9 = scmp.lt.s32.totalorder %s715_s17, 3 }
   0xc   : > { %s793_s25 = scalar_select %p115_p7, %s703_s14, %s117_s21  }
   0xd   : > { %p183_p10 = pnand %p549_p6, %p182_p9 }
   0xe   : > { %p220_p11 = scmp.lt.s32.totalorder (!%p183_p10), %s707_s15, 1  ;;  %s216_s29 = sand.u32 (!%p183_p10), 1, %s699_s13  }
   0xf   : > { %186 = sbr.rel (%p183_p10) target bundleno = 185 (0xb9), region = 32  ;;  %s550_s30 = sshll.u32 (!%p183_p10), %s216_s29, 7 }
  0x10   : > { %s859_s4 = scalar_lea.vmem (!%p183_p10), [#allocation2], %s550_s30  ;;  %s559_s5 = sshll.u32 (!%p183_p10), %s707_s15, 7 }
  0x11   : > { %s433_s8 = scalar_lea.hbm (!%p183_p10), %s953_s3, %s559_s5  ;;  %s419_s10 = scalar_lea.sflag (!%p183_p10), [#allocation3], %s216_s29 }
  0x12   : > { %s436_s9 = sshll.u32 (!%p183_p10), %s433_s8, 4  ;;  %s437_s9 = int_to_ptr.hbm [resolvable:$true] %s436_s9 }
  0x13   : > { %s651_s11 = sshra.s32 (!%p183_p10), %s437_s9, 4  ;;  %s652_s11 = int_to_ptr.hbm [resolvable:$true] %s651_s11 }
  0x14   : > { %v621_v0 = vld [vmem:[%s951_s1 + $0x4] ss:$0 sm:$0xff]  ;;  %v717_v1 = vmov 0   ;;  %v622_v2 = vld [vmem:[%s951_s1 + $0x2] ss:$0 sm:$0xff]  ;;  %s221_s21 = scalar_select %p220_p11, %s707_s15, 1 }
  0x15   : > { %620 = vset.pattern.permute.xlu2 %v717_v1  ;;  %619 = vset.pattern.permute.xlu1 %v717_v1  ;;  %v623_v3 = vld [vmem:[%s951_s1] ss:$0 sm:$0xff]  ;;  %v624_v4 = vld [vmem:[%s951_s1 + $0x5] ss:$0 sm:$0xff]  ;;  %v625_v5 = vld [vmem:[%s951_s1 + $0x3] ss:$0 sm:$0xff]  ;;  %p658_p1 = scmp.lt.s32.totalorder %s652_s11, %s953_s3 }
  0x16   : > { %618 = vset.pattern.permute.xlu0 %v717_v1  ;;  %298 = vperm.xlu2 %620, %v621_v0   ;;  %v626_v6 = vld [vmem:[%s951_s1 + $0x1] ss:$0 sm:$0xff]  ;;  %v627_v7 = vld [vmem:[%s952_s2] ss:$0 sm:$0xff]  ;;  %v628_v8 = vld [vmem:[%s951_s1 + $0x7] ss:$0 sm:$0xff] }
  0x17   : > { %290 = vperm.xlu1 %619, %v622_v2   ;;  %282 = vperm.xlu0 %618, %v623_v3   ;;  %v629_v9 = vld [vmem:[%s951_s1 + $0x6] ss:$0 sm:$0xff]  ;;  %v630_v10 = vld [vmem:[%s952_s2 + $0x3] ss:$0 sm:$0xff]  ;;  %v631_v11 = vld [vmem:[%s952_s2 + $0x2] ss:$0 sm:$0xff] }
  0x18   : > { %v632_v12 = vld [vmem:[%s952_s2 + $0x1] ss:$0 sm:$0xff]  ;;  %v633_v13 = vld [vmem:[%s952_s2 + $0x6] ss:$0 sm:$0xff]  ;;  %v634_v14 = vld [vmem:[%s952_s2 + $0x5] ss:$0 sm:$0xff] }
  0x19   : > { %v635_v15 = vld [vmem:[%s952_s2 + $0x4] ss:$0 sm:$0xff]  ;;  %v636_v16 = vld [vmem:[%s952_s2 + $0x7] ss:$0 sm:$0xff]  ;;  %s558_s23 = sshll.u32 %s221_s21, 7  ;;  %vm401_vm0 = vcmask 130048  }
  0x1a   : > { %s852_s28 = scalar_lea.vmem %s950_s0, %s558_s23  ;;  %s434_s15 = sshll.u32 %s859_s4, 4  ;;  %s435_s15 = int_to_ptr.vmem [resolvable:$true] %s434_s15 }
  0x1b   : > { %v241_v20 = vld [vmem:[%s852_s28] sm:$0xff]  ;;  %v242_v21 = vld [vmem:[%s852_s28 + $0x8] sm:$0xff]  ;;  %v247_v28 = vld [vmem:[%s852_s28 + $0x30] sm:$0xff]  ;;  %s653_s18 = scalar_lea.hbm %s652_s11, 128  ;;  %s657_s23 = scalar_lea.hbm %s953_s3, 256 }
  0x1c   : > { %v248_v29 = vld [vmem:[%s852_s28 + $0x38] sm:$0xff]  ;;  %v253_v37 = vld [vmem:[%s852_s28 + $0x60] sm:$0xff]  ;;  %v254_v38 = vld [vmem:[%s852_s28 + $0x68] sm:$0xff]  ;;  %p654_p12 = scmp.ne.s32.totalorder %s652_s11, %s653_s18  ;;  %p659_p2 = scmp.lt.s32.totalorder %s657_s23, %s653_s18 }
  0x1d   : > { %v245_v44 = vld [vmem:[%s852_s28 + $0x20] sm:$0xff]  ;;  %v246_v45 = vld [vmem:[%s852_s28 + $0x28] sm:$0xff]  ;;  %v243_v48 = vld [vmem:[%s852_s28 + $0x10] sm:$0xff] }
  0x1e   : > { %302 = vperm.xlu2 %620, %v624_v4   ;;  %v244_v49 = vld [vmem:[%s852_s28 + $0x18] sm:$0xff]  ;;  %v251_v60 = vld [vmem:[%s852_s28 + $0x50] sm:$0xff]  ;;  %v249_v62 = vld [vmem:[%s852_s28 + $0x40] sm:$0xff]  ;;  %p655_p13 = pnand %p654_p12, %p780_p4  ;;  %p660_p3 = por %p659_p2, %p658_p1 }
  0x1f   : > { %294 = vperm.xlu1 %619, %v625_v5   ;;  %286 = vperm.xlu0 %618, %v626_v6   ;;  %v252_v61 = vld [vmem:[%s852_s28 + $0x58] sm:$0xff]  ;;  %v250_v63 = vld [vmem:[%s852_s28 + $0x48] sm:$0xff] }
  0x20   : > { %p656_p0 = pneg %p655_p13 }
  0x22   : > { %p661_p5 = pnand %p660_p3, %p656_p0 }
  0x26   : > { %354 = vperm.xlu2 %620, %v627_v7  }
  0x27   : > { %310 = vperm.xlu1 %619, %v628_v8   ;;  %306 = vperm.xlu0 %618, %v629_v9  }
  0x2e   : > { %366 = vperm.xlu2 %620, %v630_v10   ;;  %v255_v10 = vld [vmem:[%s852_s28 + $0x70] sm:$0xff] }
  0x2f   : > { %362 = vperm.xlu1 %619, %v631_v11   ;;  %358 = vperm.xlu0 %618, %v632_v12   ;;  %v256_v11 = vld [vmem:[%s852_s28 + $0x78] sm:$0xff] }
  0x36   : > { %378 = vperm.xlu2 %620, %v633_v13  }
  0x37   : > { %374 = vperm.xlu1 %619, %v634_v14   ;;  %370 = vperm.xlu0 %618, %v635_v15  }
  0x3f   : > { %382 = vperm.xlu0 %618, %v636_v16  }
  0x70   : > { %v843_v17 = vpop.permute.xlu2 %298 }
  0x71   : > { %v321_v2 = vmul.f32 %v843_v17, %v249_v62  ;;  %v322_v3 = vmul.f32 %v843_v17, %v250_v63 }
  0x78   : > { %v847_v18 = vpop.permute.xlu2 %302 }
  0x79   : > { %v323_v0 = vmul.f32 %v847_v18, %v251_v60  ;;  %v324_v1 = vmul.f32 %v847_v18, %v252_v61 }
  0x80   : > { %v355_v19 = vpop.permute.xlu2 %354 }
  0x88   : > { %v367_v31 = vpop.permute.xlu2 %366 }
  0x89   : > { %v291_v22 = vpop.permute.xlu1 %290  ;;  %v283_v23 = vpop.permute.xlu0 %282 }
  0x8a   : > { %v313_v24 = vmul.f32 %v283_v23, %v241_v20  ;;  %v314_v25 = vmul.f32 %v283_v23, %v242_v21  ;;  %v317_v50 = vmul.f32 %v291_v22, %v245_v44  ;;  %v318_v51 = vmul.f32 %v291_v22, %v246_v45 }
  0x8c   : > { %v385_v26 = vadd.f32 %v355_v19, %v313_v24  ;;  %v386_v27 = vadd.f32 %v355_v19, %v314_v25 }
  0x8e   : > { %402 = vst.msk [vmem:[%s859_s4] sm:$0xff] %vm401_vm0, %v385_v26 }
  0x8f   : > { %403 = vst.msk [vmem:[%s859_s4 + $0x8] sm:$0xff] %vm401_vm0, %v386_v27 }
  0x90   : > { %v379_v43 = vpop.permute.xlu2 %378 }
  0x91   : > { %v295_v30 = vpop.permute.xlu1 %294  ;;  %v287_v34 = vpop.permute.xlu0 %286 }
  0x92   : > { %v319_v32 = vmul.f32 %v295_v30, %v247_v28  ;;  %v320_v33 = vmul.f32 %v295_v30, %v248_v29  ;;  %v315_v52 = vmul.f32 %v287_v34, %v243_v48  ;;  %v316_v53 = vmul.f32 %v287_v34, %v244_v49 }
  0x94   : > { %v391_v35 = vadd.f32 %v367_v31, %v319_v32  ;;  %v392_v36 = vadd.f32 %v367_v31, %v320_v33 }
  0x96   : > { %408 = vst.msk [vmem:[%s859_s4 + $0x30] sm:$0xff] %vm401_vm0, %v391_v35 }
  0x97   : > { %409 = vst.msk [vmem:[%s859_s4 + $0x38] sm:$0xff] %vm401_vm0, %v392_v36 }
  0x99   : > { %v311_v39 = vpop.permute.xlu1 %310  ;;  %v307_v40 = vpop.permute.xlu0 %306 }
  0x9a   : > { %v325_v41 = vmul.f32 %v307_v40, %v253_v37  ;;  %v326_v42 = vmul.f32 %v307_v40, %v254_v38  ;;  %v327_v12 = vmul.f32 %v311_v39, %v255_v10  ;;  %v328_v13 = vmul.f32 %v311_v39, %v256_v11 }
  0x9c   : > { %v397_v46 = vadd.f32 %v379_v43, %v325_v41  ;;  %v398_v47 = vadd.f32 %v379_v43, %v326_v42 }
  0x9e   : > { %414 = vst.msk [vmem:[%s859_s4 + $0x60] sm:$0xff] %vm401_vm0, %v397_v46 }
  0x9f   : > { %415 = vst.msk [vmem:[%s859_s4 + $0x68] sm:$0xff] %vm401_vm0, %v398_v47 }
  0xa1   : > { %v363_v54 = vpop.permute.xlu1 %362  ;;  %v359_v57 = vpop.permute.xlu0 %358 }
  0xa2   : > { %v389_v55 = vadd.f32 %v363_v54, %v317_v50  ;;  %v390_v56 = vadd.f32 %v363_v54, %v318_v51  ;;  %v387_v58 = vadd.f32 %v359_v57, %v315_v52  ;;  %v388_v59 = vadd.f32 %v359_v57, %v316_v53 }
  0xa4   : > { %406 = vst.msk [vmem:[%s859_s4 + $0x20] sm:$0xff] %vm401_vm0, %v389_v55 }
  0xa5   : > { %407 = vst.msk [vmem:[%s859_s4 + $0x28] sm:$0xff] %vm401_vm0, %v390_v56 }
  0xa6   : > { %404 = vst.msk [vmem:[%s859_s4 + $0x10] sm:$0xff] %vm401_vm0, %v387_v58 }
  0xa7   : > { %405 = vst.msk [vmem:[%s859_s4 + $0x18] sm:$0xff] %vm401_vm0, %v388_v59 }
  0xa9   : > { %v375_v4 = vpop.permute.xlu1 %374  ;;  %v371_v7 = vpop.permute.xlu0 %370 }
  0xaa   : > { %v395_v5 = vadd.f32 %v375_v4, %v323_v0  ;;  %v396_v6 = vadd.f32 %v375_v4, %v324_v1  ;;  %v393_v8 = vadd.f32 %v371_v7, %v321_v2  ;;  %v394_v9 = vadd.f32 %v371_v7, %v322_v3 }
  0xac   : > { %412 = vst.msk [vmem:[%s859_s4 + $0x50] sm:$0xff] %vm401_vm0, %v395_v5 }
  0xad   : > { %413 = vst.msk [vmem:[%s859_s4 + $0x58] sm:$0xff] %vm401_vm0, %v396_v6 }
  0xae   : > { %410 = vst.msk [vmem:[%s859_s4 + $0x40] sm:$0xff] %vm401_vm0, %v393_v8 }
  0xaf   : > { %411 = vst.msk [vmem:[%s859_s4 + $0x48] sm:$0xff] %vm401_vm0, %v394_v9 }
  0xb1   : > { %v383_v14 = vpop.permute.xlu0 %382 }
  0xb2   : > { %v399_v15 = vadd.f32 %v383_v14, %v327_v12  ;;  %v400_v16 = vadd.f32 %v383_v14, %v328_v13 }
  0xb4   : > { %416 = vst.msk [vmem:[%s859_s4 + $0x70] sm:$0xff] %vm401_vm0, %v399_v15 }
  0xb5   : > { %417 = vst.msk [vmem:[%s859_s4 + $0x78] sm:$0xff] %vm401_vm0, %v400_v16 }
  0xb6   : > { %664 = shalt.err (!%p661_p5)
}
  0xb7   : > { %s718_s28 = smov 128   ;;  %s719_s29 = smov 8  }
  0xb8   : > { %560 = dma.vmem_to_hbm [thread:$0]  (%p780_p4), %s435_s15, 2048, %s437_s9, %s419_s10, %s718_s28, %s718_s28, %s719_s29  }
  0xb9 PF: > { %p566_p6 = scmp.ge.s32.totalorder %s715_s17, 2  ;;  %s451_s30 = sand.u32 1, %s695_s12  }
  0xba   : > { %s452_s4 = scalar_lea.sflag [#allocation3], %s451_s30 }
  0xbb   : > { %p563_p7 = pnand %p566_p6, %p787_p8 }
  0xbd   : > { %p564_p9 = pneg %p563_p7 }
  0xbf   : > { %690 = dma.done.wait (%p564_p9), %s452_s4, 2048  }
  0xc0   : > { %692 = vsyncadd (%p564_p9), %s452_s4, 4294965248  ;;  %s16_s17 = sadd.s32 1, %s715_s17   ;;  %s956_s12 = smov %s699_s13 }
  0xc1   : > { %p13_p10 = scmp.ge.s32.totalorder %s16_s17, 4   ;;  %s957_s13 = smov %s703_s14 }
  0xc2   : > { %s958_s14 = smov %s793_s25  ;;  %s959_s15 = smov %s711_s16 }
  0xc3   : > { %s960_s16 = smov %s962_s20  ;;  %15 = sbr.rel (!%p13_p10) target bundleno = 4 (0x4), region = 73 }
  0xc8   :  { %458 = vsyncpa [#allocation3], 1 }
  0xc9   :  { %460 = vsyncpa [#allocation3 + $0x1], 1 }

// kernel: fused_conv_bn.2
= control target key start
LH: loop header
LB: loop body
LE: loop exit
PB: predicated region body
PF: predicated region fallthrough
CT: control target
= control target key end

     0   :  { %s1321_s15 = smov 0   ;;  %s1323_s16 = smov 0   ;;  %s1444_s0 = inlined_call_operand.vmem [shape: f32[2,8,384], index: 0, kind: input, shape index: {}]   ;;  %s1445_s1 = inlined_call_operand.vmem [shape: f32[9,8,8], index: 1, kind: input, shape index: {}]   ;;  %s1446_s2 = inlined_call_operand.vmem [shape: f32[1,288], index: 2, kind: input, shape index: {}]   ;;  %s1447_s3 = inlined_call_operand.vmem [shape: f32[2,8,288], index: 3, kind: output, shape index: {0}]   ;;  %s1448_s4 = inlined_call_operand.vmem [shape: f32[2,2,8], index: 4, kind: output, shape index: {1}]  }
   0x1   :  { %s1325_s17 = smov 0  }
   0x2 LB: > { %s27_s18 = sadd.s32 1, %s1282_s16  ;;  %p1150_p0 = scmp.ge.s32.totalorder %s1286_s17, 1  ;;  %s1286_s17 = sphi %s1325_s17, %s15_s17   ;;  %s1282_s16 = sphi %s1323_s16, %s1450_s16   ;;  %s1278_s15 = sphi %s1321_s15, %s1449_s15  }
   0x3   : > { %p29_p1 = scmp.ge.s32.totalorder %s27_s18, 2  ;;  %p190_p2 = scmp.lt.s32.totalorder %s1286_s17, 3 }
   0x5   : > { %s1452_s18 = smov (%p29_p1, %s27_s18), 0  ;;  %p191_p3 = pnand %p1150_p0, %p190_p2 }
   0x6   : > { %p231_p4 = scmp.lt.s32.totalorder (!%p191_p3), %s1278_s15, 1  ;;  %s1288_s23 = smov (!%p191_p3), 126  }
   0x7   : > { %194 = sbr.rel (%p191_p3) target bundleno = 448 (0x1c0), region = 32  ;;  %s1289_s24 = smov (!%p191_p3), 127  }
   0x8   : > { %s1290_s25 = smov (!%p191_p3), 110   ;;  %s1291_s26 = smov (!%p191_p3), 109  }
   0x9   : > { %s1292_s27 = smov (!%p191_p3), 108   ;;  %s1293_s28 = smov (!%p191_p3), 92  }
   0xa   : > { %s1294_s29 = smov (!%p191_p3), 91   ;;  %s1295_s30 = smov (!%p191_p3), 90  }
   0xc   : > { %s1454_s15 = smov (!%p231_p4, %s1278_s15), 1  ;;  %vm277_vm0 = vcmask 64512   ;;  %v256_v6 = vld [vmem:[%s1445_s1] sm:$0xff]  ;;  %vm412_vm1 = vcmask 1031168   ;;  %vm492_vm2 = vcmask 900096   ;;  %v1154_v16 = vld [vmem:[%s1445_s1 + $0x8] sm:$0xff] }
   0xd   : > { %s1191_s19 = smul.u32 24, %s1454_s15  ;;  %vm271_vm3 = vcmask 1039360   ;;  %vm652_vm4 = vcmask 883712   ;;  %v1161_v28 = vld [vmem:[%s1445_s1 + $0x10] sm:$0xff]  ;;  %vm572_vm5 = vcmask 891904   ;;  %v1165_v35 = vld [vmem:[%s1445_s1 + $0x18] sm:$0xff] }
   0xe   : > { %vm732_vm6 = vcmask 752640   ;;  %v1169_v45 = vld [vmem:[%s1445_s1 + $0x20] sm:$0xff]  ;;  %v1173_v47 = vld [vmem:[%s1445_s1 + $0x28] sm:$0xff]  ;;  %vm812_vm7 = vcmask 744448   ;;  %v1177_v54 = vld [vmem:[%s1445_s1 + $0x30] sm:$0xff]  ;;  %vm892_vm8 = vcmask 736256  }
   0xf   : > { %s235_s22 = scalar_lea.vmem %s1444_s0, %s1191_s19  ;;  %v1181_v61 = vld [vmem:[%s1445_s1 + $0x38] sm:$0xff]  ;;  %v1185_v62 = vld [vmem:[%s1445_s1 + $0x40] sm:$0xff]  ;;  %s248_s6 = scalar_lea.vmem %s1447_s3, %s1191_s19  ;;  %vm966_vm9 = vcmask 261120   ;;  %vm999_vm10 = vcmask 57344  }
  0x10   : > { %v257_v0 = vld [vmem:[%s235_s22] sm:$0xff]  ;;  %v1347_v1 = vld [vmem:[%s235_s22 + $0x8] sm:$0xff]  ;;  %v1349_v2 = vld [vmem:[%s235_s22 + $0x10] sm:$0xff]  ;;  %s1153_s19 = sshll.u32 %s1454_s15, 1 }
  0x11   : > { %v1229_v3 = vpack.i.bf16 %v1347_v1, %v257_v0  ;;  %v1224_v4 = vpack.i.bf16 %v257_v0, %v1349_v2  ;;  %v1234_v5 = vpack.i.bf16 %v1349_v2, %v1347_v1  ;;  %359 = vmatpush.msra.mxu3 %v257_v0  ;;  %s255_s9 = scalar_lea.vmem %s1448_s4, %s1153_s19 }
  0x12   : > { %1158 = vmatmul.msk.f32.vlgmr.msra.gmra.mxu3 %vm277_vm0, %v256_v6 }
  0x13   : > { %1230 = vrot.lane.b32.xlu1 %v1229_v3, %s1288_s23  ;;  %1225 = vrot.lane.b32.xlu0 %v1224_v4, %s1289_s24 }
  0x14   : > { %1235 = vrot.lane.b32.xlu2 %v1234_v5, %s1290_s25 }
  0x1b   : > { %410 = vrot.lane.b32.xlu1 %v1349_v2, %s1288_s23  ;;  %267 = vrot.lane.b32.xlu0 %v1347_v1, %s1289_s24 }
  0x1c   : > { %486 = vrot.lane.b32.xlu2 %v257_v0, %s1290_s25 }
  0x23   : > { %568 = vrot.lane.b32.xlu1 %v1347_v1, %s1291_s26  ;;  %1240 = vrot.lane.b32.xlu0 %v1224_v4, %s1291_s26 }
  0x24   : > { %1245 = vrot.lane.b32.xlu2 %v1229_v3, %s1292_s27 }
  0x2b   : > { %650 = vrot.lane.b32.xlu1 %v1349_v2, %s1292_s27  ;;  %1250 = vrot.lane.b32.xlu0 %v1229_v3, %s1293_s28 }
  0x2c   : > { %730 = vrot.lane.b32.xlu2 %v1349_v2, %s1293_s28 }
  0x33   : > { %1255 = vrot.lane.b32.xlu0 %v1234_v5, %s1294_s29  ;;  %806 = vrot.lane.b32.xlu1 %v257_v0, %s1294_s29 }
  0x34   : > { %1260 = vrot.lane.b32.xlu2 %v1224_v4, %s1295_s30 }
  0x3b   : > { %888 = vrot.lane.b32.xlu0 %v1347_v1, %s1295_s30 }
  0x6e   : > { %v1236_v7 = vpop.permute.xlu2 %1235 }
  0x6f   : > { %v1238_v9 = vunpack.i.h.bf16 %v1236_v7  ;;  %v1237_v10 = vunpack.i.l.bf16 %v1236_v7 }
  0x71   : > { %v494_v18 = vsel %vm492_vm2, %v1237_v10, %v1238_v9 }
  0x76   : > { %v487_v8 = vpop.permute.xlu2 %486 }
  0x77   : > { %v493_v29 = vsel %vm492_vm2, %v487_v8, %v1237_v10 }
  0x7e   : > { %v1246_v19 = vpop.permute.xlu2 %1245 }
  0x7f   : > { %v1248_v23 = vunpack.i.h.bf16 %v1246_v19  ;;  %v1247_v27 = vunpack.i.l.bf16 %v1246_v19 }
  0x81   : > { %v653_v30 = vsel %vm652_vm4, %v1247_v27, %v1248_v23 }
  0x85   : > { %v1231_v11 = vpop.permute.xlu1 %1230  ;;  %v1226_v12 = vpop.permute.xlu0 %1225 }
  0x86   : > { %v1233_v13 = vunpack.i.h.bf16 %v1231_v11  ;;  %v1232_v14 = vunpack.i.l.bf16 %v1231_v11  ;;  %v1227_v15 = vunpack.i.l.bf16 %v1226_v12  ;;  %v1228_v20 = vunpack.i.h.bf16 %v1226_v12  ;;  %v731_v38 = vpop.permute.xlu2 %730 }
  0x88   : > { %336 = vmatpush.msra.mxu2 %v1227_v15  ;;  %v413_v17 = vsel %vm412_vm1, %v1232_v14, %v1233_v13 }
  0x89   : > { %1157 = vmatmul.msk.f32.vlgmr.msra.gmra.mxu2 %vm277_vm0, %v1154_v16 }
  0x8a   : > { %436 = vmatpush.msrb.mxu2 %v413_v17 }
  0x8c   : > { %536 = vmatpush.msra.mxu2 %v494_v18 }
  0x8d   : > { %v411_v21 = vpop.permute.xlu1 %410  ;;  %v268_v22 = vpop.permute.xlu0 %267 }
  0x8e   : > { %v272_v24 = vsel %vm271_vm3, %v1228_v20, %v268_v22  ;;  %v273_v25 = vsel %vm271_vm3, %v268_v22, %v1227_v15  ;;  %v414_v26 = vsel %vm412_vm1, %v1233_v13, %v411_v21  ;;  %v1261_v48 = vpop.permute.xlu2 %1260 }
  0x8f   : > { %296 = vmatpush.msra.mxu0 %v272_v24  ;;  %316 = vmatpush.msra.mxu1 %v273_v25  ;;  %v1262_v56 = vunpack.i.l.bf16 %v1261_v48  ;;  %v1263_v57 = vunpack.i.h.bf16 %v1261_v48 }
  0x90   : > { %456 = vmatpush.msrb.mxu3 %v414_v26  ;;  %1155 = vmatmul.msk.f32.vlgmr.msra.gmra.mxu0 %vm277_vm0, %v1154_v16 }
  0x91   : > { %1156 = vmatmul.msk.f32.vlgmr.msra.gmra.mxu1 %vm277_vm0, %v1154_v16  ;;  %379 = vmatpush.msrb.mxu0 %v1347_v1 }
  0x92   : > { %399 = vmatpush.msrb.mxu1 %v1349_v2  ;;  %556 = vmatpush.msra.mxu3 %v1238_v9 }
  0x93   : > { %1162 = vmatmul.msk.f32.vlgmr.msrb.gmra.mxu2 %vm277_vm0, %v1161_v28  ;;  %476 = vmatpush.msra.mxu0 %v411_v21 }
  0x94   : > { %516 = vmatpush.msra.mxu1 %v493_v29  ;;  %1163 = vmatmul.msk.f32.vlgmr.msrb.gmra.mxu3 %vm277_vm0, %v1161_v28 }
  0x95   : > { %v569_v31 = vpop.permute.xlu1 %568  ;;  %v1241_v32 = vpop.permute.xlu0 %1240  ;;  %676 = vmatpush.msrb.mxu3 %v653_v30 }
  0x96   : > { %v1243_v33 = vunpack.i.h.bf16 %v1241_v32  ;;  %v1242_v34 = vunpack.i.l.bf16 %v1241_v32  ;;  %v361_v2 = vpop.f32.mrf.mxu3 }
  0x98   : > { %1159 = vmatmul.msk.f32.vlgmr.msrb.gmra.mxu0 %vm277_vm0, %v256_v6  ;;  %636 = vmatpush.msrb.mxu2 %v1242_v34  ;;  %v573_v36 = vsel %vm572_vm5, %v1243_v33, %v569_v31  ;;  %v574_v37 = vsel %vm572_vm5, %v569_v31, %v1242_v34 }
  0x99   : > { %1160 = vmatmul.msk.f32.vlgmr.msrb.gmra.mxu1 %vm277_vm0, %v256_v6  ;;  %596 = vmatpush.msrb.mxu0 %v573_v36 }
  0x9a   : > { %616 = vmatpush.msrb.mxu1 %v574_v37 }
  0x9b   : > { %1167 = vmatmul.msk.f32.vlgmr.msra.gmra.mxu2 %vm277_vm0, %v1165_v35 }
  0x9c   : > { %1168 = vmatmul.msk.f32.vlgmr.msra.gmra.mxu3 %vm277_vm0, %v1165_v35 }
  0x9d   : > { %v651_v39 = vpop.permute.xlu1 %650  ;;  %v1251_v40 = vpop.permute.xlu0 %1250 }
  0x9e   : > { %v654_v41 = vsel %vm652_vm4, %v1248_v23, %v651_v39  ;;  %v1253_v42 = vunpack.i.h.bf16 %v1251_v40  ;;  %v1252_v43 = vunpack.i.l.bf16 %v1251_v40 }
  0xa0   : > { %1164 = vmatmul.msk.f32.vlgmr.msra.gmra.mxu0 %vm277_vm0, %v1161_v28  ;;  %v734_v44 = vsel %vm732_vm6, %v1253_v42, %v731_v38  ;;  %v733_v46 = vsel %vm732_vm6, %v1252_v43, %v1253_v42 }
  0xa1   : > { %1166 = vmatmul.msk.f32.vlgmr.msra.gmra.mxu1 %vm277_vm0, %v1165_v35  ;;  %696 = vmatpush.msra.mxu0 %v654_v41 }
  0xa2   : > { %756 = vmatpush.msra.mxu2 %v733_v46  ;;  %776 = vmatpush.msra.mxu3 %v734_v44 }
  0xa3   : > { %1172 = vmatmul.msk.f32.vlgmr.msrb.gmra.mxu2 %vm277_vm0, %v1169_v45  ;;  %716 = vmatpush.msra.mxu1 %v651_v39 }
  0xa4   : > { %1174 = vmatmul.msk.f32.vlgmr.msrb.gmra.mxu3 %vm277_vm0, %v1173_v47 }
  0xa5   : > { %v1256_v49 = vpop.permute.xlu0 %1255  ;;  %v807_v50 = vpop.permute.xlu1 %806 }
  0xa6   : > { %v1258_v51 = vunpack.i.h.bf16 %v1256_v49  ;;  %v1257_v52 = vunpack.i.l.bf16 %v1256_v49 }
  0xa8   : > { %1170 = vmatmul.msk.f32.vlgmr.msrb.gmra.mxu0 %vm277_vm0, %v1169_v45  ;;  %v813_v53 = vsel %vm812_vm7, %v807_v50, %v1257_v52  ;;  %876 = vmatpush.msrb.mxu3 %v1258_v51  ;;  %v814_v55 = vsel %vm812_vm7, %v1257_v52, %v1258_v51 }
  0xa9   : > { %1171 = vmatmul.msk.f32.vlgmr.msrb.gmra.mxu1 %vm277_vm0, %v1169_v45  ;;  %796 = vmatpush.msrb.mxu0 %v731_v38  ;;  %v968_v38 = vld [vmem:[%s1446_s2] sm:$0x7] }
  0xaa   : > { %836 = vmatpush.msrb.mxu1 %v813_v53  ;;  %856 = vmatpush.msrb.mxu2 %v814_v55  ;;  %v970_v43 = vperm.slane %v968_v38, 0  ;;  %v972_v48 = vperm.slane %v968_v38, 2 }
  0xab   : > { %1178 = vmatmul.msk.f32.vlgmr.msra.gmra.mxu2 %vm277_vm0, %v1177_v54 }
  0xac   : > { %1179 = vmatmul.msk.f32.vlgmr.msra.gmra.mxu3 %vm277_vm0, %v1177_v54  ;;  %956 = vmatpush.msra.mxu2 %v1262_v56 }
  0xad   : > { %v889_v58 = vpop.permute.xlu0 %888 }
  0xae   : > { %v893_v59 = vsel %vm892_vm8, %v1263_v57, %v889_v58  ;;  %v894_v60 = vsel %vm892_vm8, %v889_v58, %v1262_v56 }
  0xb0   : > { %1175 = vmatmul.msk.f32.vlgmr.msra.gmra.mxu0 %vm277_vm0, %v1173_v47 }
  0xb1   : > { %1176 = vmatmul.msk.f32.vlgmr.msra.gmra.mxu1 %vm277_vm0, %v1173_v47  ;;  %916 = vmatpush.msra.mxu0 %v893_v59  ;;  %v971_v47 = vperm.slane %v968_v38, 1 }
  0xb2   : > { %936 = vmatpush.msra.mxu1 %v894_v60 }
  0xb3   : > { %1183 = vmatmul.msk.f32.vlgmr.msrb.gmra.mxu2 %vm277_vm0, %v1181_v61 }
  0xb4   : > { %1184 = vmatmul.msk.f32.vlgmr.msrb.gmra.mxu3 %vm277_vm0, %v1181_v61 }
  0xb8   : > { %1180 = vmatmul.msk.f32.vlgmr.msrb.gmra.mxu0 %vm277_vm0, %v1177_v54 }
  0xb9   : > { %1182 = vmatmul.msk.f32.vlgmr.msrb.gmra.mxu1 %vm277_vm0, %v1181_v61 }
  0xbb   : > { %1188 = vmatmul.msk.f32.vlgmr.msra.gmra.mxu2 %vm277_vm0, %v1185_v62 }
  0xc0   : > { %1186 = vmatmul.msk.f32.vlgmr.msra.gmra.mxu0 %vm277_vm0, %v1185_v62 }
  0xc1   : > { %1187 = vmatmul.msk.f32.vlgmr.msra.gmra.mxu1 %vm277_vm0, %v1185_v62 }
 0x10c   : > { %v338_v63 = vpop.f32.mrf.mxu2 }
 0x10d   : > { %v298_v0 = vpop.f32.mrf.mxu0 }
 0x10e   : > { %v318_v1 = vpop.f32.mrf.mxu1  ;;  %v362_v18 = vadd.f32 %v361_v2, %v298_v0  ;;  %v995_v2 = vlaneseq }
 0x115   : > { %v381_v3 = vpop.f32.mrf.mxu0 }
 0x116   : > { %v438_v4 = vpop.f32.mrf.mxu2  ;;  %v401_v5 = vpop.f32.mrf.mxu1  ;;  %v382_v15 = vadd.f32 %v381_v3, %v318_v1  ;;  %v996_v3 = vand.u32 127, %v995_v2 }
 0x117   : > { %v458_v6 = vpop.f32.mrf.mxu3  ;;  %v402_v16 = vadd.f32 %v401_v5, %v338_v63  ;;  %v481_v22 = vadd.f32 %v438_v4, %v362_v18 }
 0x118   : > { %v482_v24 = vadd.f32 %v458_v6, %v382_v15 }
 0x11d   : > { %v478_v7 = vpop.f32.mrf.mxu0 }
 0x11e   : > { %v538_v8 = vpop.f32.mrf.mxu2  ;;  %v518_v9 = vpop.f32.mrf.mxu1  ;;  %v483_v21 = vadd.f32 %v478_v7, %v402_v16 }
 0x11f   : > { %v558_v10 = vpop.f32.mrf.mxu3  ;;  %v561_v25 = vadd.f32 %v518_v9, %v481_v22  ;;  %v562_v26 = vadd.f32 %v538_v8, %v482_v24 }
 0x120   : > { %v563_v27 = vadd.f32 %v558_v10, %v483_v21 }
 0x125   : > { %v598_v11 = vpop.f32.mrf.mxu0 }
 0x126   : > { %v638_v12 = vpop.f32.mrf.mxu2  ;;  %v618_v13 = vpop.f32.mrf.mxu1  ;;  %v641_v28 = vadd.f32 %v598_v11, %v561_v25 }
 0x127   : > { %v678_v14 = vpop.f32.mrf.mxu3  ;;  %v643_v29 = vadd.f32 %v638_v12, %v563_v27  ;;  %v642_v30 = vadd.f32 %v618_v13, %v562_v26 }
 0x128   : > { %v721_v36 = vadd.f32 %v678_v14, %v641_v28 }
 0x12d   : > { %v698_v17 = vpop.f32.mrf.mxu0 }
 0x12e   : > { %v758_v19 = vpop.f32.mrf.mxu2  ;;  %v718_v20 = vpop.f32.mrf.mxu1  ;;  %v722_v34 = vadd.f32 %v698_v17, %v642_v30 }
 0x12f   : > { %v778_v23 = vpop.f32.mrf.mxu3  ;;  %v723_v35 = vadd.f32 %v718_v20, %v643_v29  ;;  %v801_v39 = vadd.f32 %v758_v19, %v721_v36 }
 0x130   : > { %v802_v41 = vadd.f32 %v778_v23, %v722_v34 }
 0x135   : > { %v798_v31 = vpop.f32.mrf.mxu0 }
 0x136   : > { %v858_v32 = vpop.f32.mrf.mxu2  ;;  %v838_v33 = vpop.f32.mrf.mxu1  ;;  %v803_v37 = vadd.f32 %v798_v31, %v723_v35 }
 0x137   : > { %v878_v40 = vpop.f32.mrf.mxu3  ;;  %v881_v42 = vadd.f32 %v838_v33, %v801_v39  ;;  %v882_v44 = vadd.f32 %v858_v32, %v802_v41 }
 0x138   : > { %v883_v45 = vadd.f32 %v878_v40, %v803_v37 }
 0x13d   : > { %v918_v46 = vpop.f32.mrf.mxu0 }
 0x13e   : > { %v958_v49 = vpop.f32.mrf.mxu2  ;;  %v961_v50 = vadd.f32 %v918_v46, %v881_v42  ;;  %v938_v51 = vpop.f32.mrf.mxu1 }
 0x13f   : > { %v963_v52 = vadd.f32 %v958_v49, %v883_v45  ;;  %v962_v53 = vadd.f32 %v938_v51, %v882_v44 }
 0x140   : > { %964 = vst [vmem:[%s248_s6] sm:$0xff] %v961_v50  ;;  %v976_v54 = vmul.f32 %v970_v43, %v961_v50 }
 0x141   : > { %965 = vst [vmem:[%s248_s6 + $0x8] sm:$0xff] %v962_v53  ;;  %v977_v55 = vmul.f32 %v971_v47, %v962_v53  ;;  %v978_v56 = vmul.f32 %v972_v48, %v963_v52 }
 0x142   : > { %v985_v57 = vmul.f32 %v976_v54, %v961_v50  ;;  %967 = vst.msk [vmem:[%s248_s6 + $0x10] sm:$0xff] %vm966_vm9, %v963_v52 }
 0x143   : > { %v986_v58 = vmul.f32 %v977_v55, %v962_v53  ;;  %v979_v59 = vadd.f32 %v977_v55, %v976_v54  ;;  %v987_v60 = vmul.f32 %v978_v56, %v963_v52  ;;  %v980_v61 = vsel %vm966_vm9, %v978_v56, 0.0 }
 0x145   : > { %v981_v62 = vadd.f32 %v980_v61, %v979_v59  ;;  %v988_v63 = vadd.f32 %v986_v58, %v985_v57  ;;  %v989_v0 = vsel %vm966_vm9, %v987_v60, 0.0 }
 0x147   : > { %982 = vadd.xlane.f32.xlu1 %v981_v62  ;;  %v990_v1 = vadd.f32 %v989_v0, %v988_v63 }
 0x149   : > { %991 = vadd.xlane.f32.xlu2 %v990_v1 }
 0x1ba   : > { %v983_v4 = vpop.xlane.xlu1 %982 }
 0x1bb   : > { %v997_v5 = vperm.slane %v983_v4, %v996_v3 }
 0x1bc   : > { %v992_v6 = vpop.xlane.xlu2 %991 }
 0x1bd   : > { %1000 = vst.msk [vmem:[%s255_s9] sm:$0x1] %vm999_vm10, %v997_v5  ;;  %v1002_v7 = vperm.slane %v992_v6, %v996_v3 }
 0x1bf   : > { %1004 = vst.msk [vmem:[%s255_s9 + $0x1] sm:$0x1] %vm999_vm10, %v1002_v7 }
 0x1c0 PF: > { %s15_s17 = sadd.s32 1, %s1286_s17   ;;  %s1449_s15 = smov %s1282_s16 }
 0x1c1   : > { %p12_p5 = scmp.ge.s32.totalorder %s15_s17, 4   ;;  %s1450_s16 = smov %s1452_s18 }
 0x1c3   :  { %14 = sbr.rel (!%p12_p5) target bundleno = 2 (0x2), region = 85 }

</bundles_post_ra>
